<compile_context>
chip_gen: v5e
topology: v5e:2x2
jax: 0.10.0
libtpu: 0.0.40
codegen_flags: <defaults>
</compile_context>

<pallas_src>
import functools

import jax
import jax.numpy as jnp
from jax.experimental import pallas as pl
from jax.experimental.pallas import tpu as pltpu


def _policy_mlp_kernel(x_ref, w1_ref, b1_ref, w2_ref, b2_ref, o_ref):
    x = x_ref[...]                      # (TILE_B, n_ins)  f32
    w1 = w1_ref[...]                    # (n_ins, H_PAD)   f32
    n_ins = x.shape[1]

    # ---- layer 1 on the VPU: K is tiny (4), so unrolled broadcast FMAs beat
    # a mostly-zero 128/256-deep MXU contraction.
    acc = jnp.broadcast_to(b1_ref[...], (x.shape[0], w1.shape[1]))  # f32
    for k in range(n_ins):              # static unroll (n_ins known at trace)
        acc = acc + x[:, k:k + 1] * w1[k:k + 1, :]
    h = jnp.tanh(acc)                   # (TILE_B, H_PAD) f32 (EUP)

    # ---- layer 2 on the MXU: bf16 operands, f32 accumulation.
    y = jnp.dot(h.astype(jnp.bfloat16), w2_ref[...],
                preferred_element_type=jnp.float32)
    o_ref[...] = (y + b2_ref[...]).astype(o_ref.dtype)


def _round_up(n, m):
    return ((n + m - 1) // m) * m


@functools.partial(jax.jit, static_argnames=("tile_b",))
def policy_nn_forward(x, w1, b1, w2, b2, *, tile_b=512):
    """Fused PolicyNN forward: y = tanh(x @ w1 + b1) @ w2 + b2.

    x: (B, n_ins) f32; w1: (n_ins, 64); b1: (1, 64); w2: (64, n_outs);
    b2: (1, n_outs). Weights are stored (in_features, out_features), i.e. the
    transpose of PyTorch's nn.Linear weight.
    """
    B, n_ins = x.shape
    hidden = w1.shape[1]
    n_outs = w2.shape[1]

    H_PAD = _round_up(max(hidden, 128), 128)    # lane-dense hidden
    O_PAD = _round_up(max(n_outs, 128), 128)    # lane-dense output

    b1 = b1.reshape(1, hidden)
    b2 = b2.reshape(1, n_outs)

    # Zero-pad to lane-dense shapes. Padded hidden units get zero weight and
    # zero bias -> tanh(0) = 0 -> they contribute nothing through the (also
    # zero-padded) rows of w2, so the math is unchanged.
    w1_p = jnp.pad(w1, ((0, 0), (0, H_PAD - hidden))).astype(jnp.float32)
    b1_p = jnp.pad(b1, ((0, 0), (0, H_PAD - hidden))).astype(jnp.float32)
    w2_p = jnp.pad(w2, ((0, H_PAD - hidden), (0, O_PAD - n_outs)))
    w2_p = w2_p.astype(jnp.bfloat16)            # MXU-native, halves HBM bytes
    b2_p = jnp.pad(b2, ((0, 0), (0, O_PAD - n_outs))).astype(jnp.float32)

    # Batch tiling (sublane-aligned); pad B up to a whole number of tiles.
    tile_b = max(8, min(tile_b, _round_up(max(B, 1), 8)))
    tile_b = _round_up(tile_b, 8)
    B_pad = _round_up(max(B, 1), tile_b)
    x_p = jnp.pad(x.astype(jnp.float32), ((0, B_pad - B), (0, 0)))

    grid = (B_pad // tile_b,)
    out_padded = pl.pallas_call(
        _policy_mlp_kernel,
        out_shape=jax.ShapeDtypeStruct((B_pad, O_PAD), jnp.float32),
        grid_spec=pltpu.PrefetchScalarGridSpec(
            num_scalar_prefetch=0,
            grid=grid,
            in_specs=[
                pl.BlockSpec((tile_b, n_ins), lambda i: (i, 0)),
                # Constant index maps: weights/biases stay VMEM-resident
                # across grid steps (no per-tile re-DMA).
                pl.BlockSpec((n_ins, H_PAD), lambda i: (0, 0)),
                pl.BlockSpec((1, H_PAD), lambda i: (0, 0)),
                pl.BlockSpec((H_PAD, O_PAD), lambda i: (0, 0)),
                pl.BlockSpec((1, O_PAD), lambda i: (0, 0)),
            ],
            out_specs=pl.BlockSpec((tile_b, O_PAD), lambda i: (i, 0)),
        ),
        compiler_params=pltpu.CompilerParams(
            dimension_semantics=("parallel",)),
    )(x_p, w1_p, b1_p, w2_p, b2_p)

    return out_padded[:B, :n_outs]


def init_params(key, n_ins, n_outs, hidden=64):
    """Deterministic synthetic init (PyTorch-like uniform fan-in scaling)."""
    k1, k2, k3, k4 = jax.random.split(key, 4)
    bound1 = 1.0 / jnp.sqrt(n_ins)
    bound2 = 1.0 / jnp.sqrt(hidden)
    # Stored already transposed relative to nn.Linear.weight: (in, out).
    w1 = jax.random.uniform(k1, (n_ins, hidden), jnp.float32, -bound1, bound1)
    b1 = jax.random.uniform(k2, (1, hidden), jnp.float32, -bound1, bound1)
    w2 = jax.random.uniform(k3, (hidden, n_outs), jnp.float32, -bound2, bound2)
    b2 = jax.random.uniform(k4, (1, n_outs), jnp.float32, -bound2, bound2)
    return w1, b1, w2, b2


if __name__ == "__main__":
    # Cart-pole: observation dim 4, action dim 2; a small batch of rollout states.
    n_ins, n_outs, batch = 4, 2, 256
    key = jax.random.PRNGKey(0)
    kx, kp = jax.random.split(key)
    x = jax.random.normal(kx, (batch, n_ins), jnp.float32)
    w1, b1, w2, b2 = init_params(kp, n_ins, n_outs)

    # tile_b=128 -> a 2-step batch grid, exercising the pipelined/parallel axis.
    out = policy_nn_forward(x, w1, b1, w2, b2, tile_b=128)
    jax.block_until_ready(out)

    # Pure-JAX f32 reference; the kernel runs the second matmul with bf16
    # operands (f32 accumulation), so use a correspondingly loosened tolerance.
    ref = jnp.tanh(x @ w1 + b1) @ w2 + b2
    assert out.shape == (batch, n_outs)
    assert jnp.allclose(out, ref, atol=1e-2, rtol=1e-2), float(
        jnp.max(jnp.abs(out - ref)))

    print("KERNEL_OK")
</pallas_src>

<mosaic_0001>
module attributes {stable_mosaic.version = 11 : i64} {
  func.func @_policy_mlp_kernel(%arg0: i32, %arg1: memref<128x4xf32, #tpu.memory_space<vmem>>, %arg2: memref<4x128xf32, #tpu.memory_space<vmem>>, %arg3: memref<1x128xf32, #tpu.memory_space<vmem>>, %arg4: memref<128x128xbf16, #tpu.memory_space<vmem>>, %arg5: memref<1x128xf32, #tpu.memory_space<vmem>>, %arg6: memref<128x128xf32, #tpu.memory_space<vmem>>) attributes {dimension_semantics = [#tpu.dimension_semantics<parallel>], iteration_bounds = array<i64: 2>, scalar_prefetch = 0 : i64, scratch_operands = 0 : i64, tpu.core_type = #tpu.core_type<tc>, window_params = [{transform_indices = @transform_0, window_bounds = array<i64: 128, 4>}, {pipeline_mode = #tpu.pipeline_mode<synchronous>, transform_indices = @transform_1, window_bounds = array<i64: 4, 128>}, {pipeline_mode = #tpu.pipeline_mode<synchronous>, transform_indices = @transform_2, window_bounds = array<i64: 1, 128>}, {pipeline_mode = #tpu.pipeline_mode<synchronous>, transform_indices = @transform_3, window_bounds = array<i64: 128, 128>}, {pipeline_mode = #tpu.pipeline_mode<synchronous>, transform_indices = @transform_4, window_bounds = array<i64: 1, 128>}, {transform_indices = @transform_5, window_bounds = array<i64: 128, 128>}]} {
    %c0 = arith.constant 0 : index
    %c0_0 = arith.constant 0 : index
    %0 = vector.load %arg1[%c0, %c0_0] : memref<128x4xf32, #tpu.memory_space<vmem>>, vector<128x4xf32>
    %c0_1 = arith.constant 0 : index
    %c0_2 = arith.constant 0 : index
    %1 = vector.load %arg2[%c0_1, %c0_2] : memref<4x128xf32, #tpu.memory_space<vmem>>, vector<4x128xf32>
    %c0_3 = arith.constant 0 : index
    %c0_4 = arith.constant 0 : index
    %2 = vector.load %arg3[%c0_3, %c0_4] : memref<1x128xf32, #tpu.memory_space<vmem>>, vector<1x128xf32>
    %3 = vector.shape_cast %2 : vector<1x128xf32> to vector<1x128xf32>
    %4 = vector.broadcast %3 : vector<1x128xf32> to vector<128x128xf32>
    %5 = vector.extract_strided_slice %0 {offsets = [0, 0], sizes = [128, 1], strides = [1, 1]} : vector<128x4xf32> to vector<128x1xf32>
    %6 = vector.extract_strided_slice %1 {offsets = [0, 0], sizes = [1, 128], strides = [1, 1]} : vector<4x128xf32> to vector<1x128xf32>
    %7 = vector.broadcast %5 : vector<128x1xf32> to vector<128x128xf32>
    %8 = vector.broadcast %6 : vector<1x128xf32> to vector<128x128xf32>
    %9 = arith.mulf %7, %8 : vector<128x128xf32>
    %10 = arith.addf %4, %9 : vector<128x128xf32>
    %11 = vector.extract_strided_slice %0 {offsets = [0, 1], sizes = [128, 1], strides = [1, 1]} : vector<128x4xf32> to vector<128x1xf32>
    %12 = vector.extract_strided_slice %1 {offsets = [1, 0], sizes = [1, 128], strides = [1, 1]} : vector<4x128xf32> to vector<1x128xf32>
    %13 = vector.broadcast %11 : vector<128x1xf32> to vector<128x128xf32>
    %14 = vector.broadcast %12 : vector<1x128xf32> to vector<128x128xf32>
    %15 = arith.mulf %13, %14 : vector<128x128xf32>
    %16 = arith.addf %10, %15 : vector<128x128xf32>
    %17 = vector.extract_strided_slice %0 {offsets = [0, 2], sizes = [128, 1], strides = [1, 1]} : vector<128x4xf32> to vector<128x1xf32>
    %18 = vector.extract_strided_slice %1 {offsets = [2, 0], sizes = [1, 128], strides = [1, 1]} : vector<4x128xf32> to vector<1x128xf32>
    %19 = vector.broadcast %17 : vector<128x1xf32> to vector<128x128xf32>
    %20 = vector.broadcast %18 : vector<1x128xf32> to vector<128x128xf32>
    %21 = arith.mulf %19, %20 : vector<128x128xf32>
    %22 = arith.addf %16, %21 : vector<128x128xf32>
    %23 = vector.extract_strided_slice %0 {offsets = [0, 3], sizes = [128, 1], strides = [1, 1]} : vector<128x4xf32> to vector<128x1xf32>
    %24 = vector.extract_strided_slice %1 {offsets = [3, 0], sizes = [1, 128], strides = [1, 1]} : vector<4x128xf32> to vector<1x128xf32>
    %25 = vector.broadcast %23 : vector<128x1xf32> to vector<128x128xf32>
    %26 = vector.broadcast %24 : vector<1x128xf32> to vector<128x128xf32>
    %27 = arith.mulf %25, %26 : vector<128x128xf32>
    %28 = arith.addf %22, %27 : vector<128x128xf32>
    %29 = math.tanh %28 : vector<128x128xf32>
    %30 = arith.truncf %29 : vector<128x128xf32> to vector<128x128xbf16>
    %c0_5 = arith.constant 0 : index
    %c0_6 = arith.constant 0 : index
    %31 = vector.load %arg4[%c0_5, %c0_6] : memref<128x128xbf16, #tpu.memory_space<vmem>>, vector<128x128xbf16>
    %cst = arith.constant dense<0.000000e+00> : vector<128x128xf32>
    %32 = tpu.matmul %30, %31, %cst {dimension_numbers = #tpu.dot_dimension_numbers<[1], [0], [0], [1], [0, 0, 1, 1], [], []>} : vector<128x128xbf16>, vector<128x128xbf16>, vector<128x128xf32> -> vector<128x128xf32>
    %c0_7 = arith.constant 0 : index
    %c0_8 = arith.constant 0 : index
    %33 = vector.load %arg5[%c0_7, %c0_8] : memref<1x128xf32, #tpu.memory_space<vmem>>, vector<1x128xf32>
    %34 = vector.broadcast %33 : vector<1x128xf32> to vector<128x128xf32>
    %35 = arith.addf %32, %34 : vector<128x128xf32>
    %c0_9 = arith.constant 0 : index
    %c0_10 = arith.constant 0 : index
    %36 = vector.load %arg6[%c0_9, %c0_10] : memref<128x128xf32, #tpu.memory_space<vmem>>, vector<128x128xf32>
    tpu.vector_store %arg6[%c0_9, %c0_10], %35 {strides = array<i32>} : memref<128x128xf32, #tpu.memory_space<vmem>>, vector<128x128xf32>,
    return
  }
  func.func @transform_0(%arg0: i32) -> (i32, i32) {
    %c0_i32 = arith.constant 0 : i32
    %c0_i32_0 = arith.constant 0 : i32
    return %arg0, %c0_i32 : i32, i32
  }
  func.func @transform_1(%arg0: i32) -> (i32, i32) {
    %c0_i32 = arith.constant 0 : i32
    %c0_i32_0 = arith.constant 0 : i32
    %c0_i32_1 = arith.constant 0 : i32
    return %c0_i32, %c0_i32_0 : i32, i32
  }
  func.func @transform_2(%arg0: i32) -> (i32, i32) {
    %c0_i32 = arith.constant 0 : i32
    %c0_i32_0 = arith.constant 0 : i32
    %c0_i32_1 = arith.constant 0 : i32
    return %c0_i32, %c0_i32_0 : i32, i32
  }
  func.func @transform_3(%arg0: i32) -> (i32, i32) {
    %c0_i32 = arith.constant 0 : i32
    %c0_i32_0 = arith.constant 0 : i32
    %c0_i32_1 = arith.constant 0 : i32
    return %c0_i32, %c0_i32_0 : i32, i32
  }
  func.func @transform_4(%arg0: i32) -> (i32, i32) {
    %c0_i32 = arith.constant 0 : i32
    %c0_i32_0 = arith.constant 0 : i32
    %c0_i32_1 = arith.constant 0 : i32
    return %c0_i32, %c0_i32_0 : i32, i32
  }
  func.func @transform_5(%arg0: i32) -> (i32, i32) {
    %c0_i32 = arith.constant 0 : i32
    %c0_i32_0 = arith.constant 0 : i32
    return %arg0, %c0_i32 : i32, i32
  }
}

</mosaic_0001>

<bundles_post_ra>
// kernel: policy_nn_forward.1
= control target key start
LH: loop header
LB: loop body
LE: loop exit
PB: predicated region body
PF: predicated region fallthrough
CT: control target
= control target key end

     0   :  { %s1055_s18 = smov 0   ;;  %s1414_s0 = inlined_call_operand.vmem [shape: f32[256,4], index: 0, kind: input, shape index: {}]   ;;  %s1415_s1 = inlined_call_operand.vmem [shape: f32[4,128], index: 1, kind: input, shape index: {}]   ;;  %s1416_s2 = inlined_call_operand.vmem [shape: f32[1,128], index: 2, kind: input, shape index: {}]   ;;  %s1417_s3 = inlined_call_operand.vmem [shape: bf16[128,128], index: 3, kind: input, shape index: {}]   ;;  %s1418_s4 = inlined_call_operand.vmem [shape: f32[1,128], index: 4, kind: input, shape index: {}]   ;;  %s1419_s5 = inlined_call_operand.vmem [shape: f32[256,128], index: 5, kind: output, shape index: {}]  }
   0x1 LB: > { %s866_s19 = sadd.s32 4294967295, %s1019_s18   ;;  %p870_p0 = scmp.ge.s32.totalorder %s1019_s18, 1  ;;  %s1019_s18 = sphi %s1055_s18, %s15_s18  }
   0x2   : > { %p188_p1 = scmp.lt.s32.totalorder %s1019_s18, 3 }
   0x4   : > { %p189_p2 = pnand %p870_p0, %p188_p1 }
   0x5   : > { %s871_s20 = sshll.u32 (!%p189_p2), %s866_s19, 4 }
   0x6   : > { %192 = sbr.rel (%p189_p2) target bundleno = 468 (0x1d4), region = 40  ;;  %p217_p3 = scmp.lt.s32.totalorder (!%p189_p2), %s871_s20, 31 }
   0xb   : > { %v1021_v0 = vmov 0   ;;  %s1421_s20 = smov (!%p217_p3, %s871_s20), 31  ;;  %v1022_v17 = vmov 1   ;;  %v1023_v18 = vmov 2   ;;  %v1024_v20 = vmov 3   ;;  %v916_v61 = vld [vmem:[%s1417_s3 + $0x38] sm:$0xff] }
   0xc   : > { %955 = vset.pattern.permute.xlu2 %v1021_v0  ;;  %954 = vset.pattern.permute.xlu1 %v1021_v0  ;;  %s872_s21 = sshll.u32 %s1421_s20, 3  ;;  %v1162_v26 = vld [vmem:[%s1415_s1] sm:$0xf] }
   0xd   : > { %953 = vset.pattern.permute.xlu0 %v1021_v0  ;;  %s1071_s24 = scalar_lea.vmem %s1414_s0, %s872_s21  ;;  %v1167_v30 = vperm.slane %v1162_v26, 0  ;;  %v1178_v32 = vld [vmem:[%s1416_s2] ss:$0 sm:$0xff]  ;;  %v1182_v35 = vperm.slane %v1162_v26, 1  ;;  %918 = vmatpush.bf16.msra.mxu2 %v916_v61  ;;  %s1393_s27 = scalar_lea.vmem %s1419_s5, %s872_s21 }
   0xe   : > { %v1074_v1 = vld [vmem:[%s1071_s24 + $0x20] sm:$0xff]  ;;  %v1077_v2 = vld [vmem:[%s1071_s24 + $0x10] sm:$0xff]  ;;  %v1086_v4 = vld [vmem:[%s1071_s24 + $0x28] sm:$0xff]  ;;  %919 = vmatpush.bf16.msra.mxu3 %v916_v61  ;;  %917 = vmatpush.bf16.msra.mxu1 %v916_v61 }
   0xf   : > { %v1080_v3 = vld [vmem:[%s1071_s24] sm:$0xff]  ;;  %271 = vperm.xlu2 %955, %v1074_v1   ;;  %261 = vperm.xlu1 %954, %v1077_v2   ;;  %v1089_v5 = vld [vmem:[%s1071_s24 + $0x18] sm:$0xff]  ;;  %v1092_v6 = vld [vmem:[%s1071_s24 + $0x8] sm:$0xff] }
  0x10   : > { %251 = vperm.xlu0 %953, %v1080_v3   ;;  %v236_v7 = vld [vmem:[%s1071_s24 + $0x40] sm:$0xff]  ;;  %v1099_v8 = vld [vmem:[%s1071_s24 + $0x38] sm:$0xff]  ;;  %v1102_v9 = vld [vmem:[%s1071_s24 + $0x30] sm:$0xff]  ;;  %745 = vmatpush.bf16.msra.mxu0 %v916_v61 }
  0x11   : > { %v1107_v10 = vld [vmem:[%s1071_s24 + $0x58] sm:$0xff]  ;;  %v1110_v11 = vld [vmem:[%s1071_s24 + $0x50] sm:$0xff]  ;;  %v237_v12 = vld [vmem:[%s1071_s24 + $0x48] sm:$0xff] }
  0x12   : > { %v1116_v13 = vld [vmem:[%s1071_s24 + $0x70] sm:$0xff]  ;;  %v241_v14 = vld [vmem:[%s1071_s24 + $0x68] sm:$0xff]  ;;  %v240_v15 = vld [vmem:[%s1071_s24 + $0x60] sm:$0xff] }
  0x13   : > { %v1122_v16 = vld [vmem:[%s1071_s24 + $0x78] sm:$0xff] }
  0x17   : > { %276 = vperm.xlu2 %955, %v1086_v4   ;;  %266 = vperm.xlu1 %954, %v1089_v5  }
  0x18   : > { %256 = vperm.xlu0 %953, %v1092_v6  }
  0x1f   : > { %291 = vperm.xlu2 %955, %v236_v7   ;;  %286 = vperm.xlu1 %954, %v1099_v8  }
  0x20   : > { %281 = vperm.xlu0 %953, %v1102_v9  }
  0x27   : > { %306 = vperm.xlu2 %955, %v1107_v10   ;;  %301 = vperm.xlu1 %954, %v1110_v11  }
  0x28   : > { %296 = vperm.xlu0 %953, %v237_v12  }
  0x2f   : > { %321 = vperm.xlu2 %955, %v1116_v13   ;;  %316 = vperm.xlu1 %954, %v241_v14  }
  0x30   : > { %311 = vperm.xlu0 %953, %v240_v15  }
  0x37   : > { %957 = vset.pattern.permute.xlu2 %v1022_v17  ;;  %956 = vset.pattern.permute.xlu1 %v1022_v17 }
  0x38   : > { %326 = vperm.xlu0 %953, %v1122_v16   ;;  %367 = vperm.xlu2 %957, %v1092_v6  }
  0x39   : > { %363 = vperm.xlu1 %956, %v1080_v3  }
  0x40   : > { %958 = vset.pattern.permute.xlu0 %v1022_v17  ;;  %379 = vperm.xlu2 %957, %v1074_v1  }
  0x41   : > { %375 = vperm.xlu1 %956, %v1089_v5   ;;  %371 = vperm.xlu0 %958, %v1077_v2  }
  0x48   : > { %387 = vperm.xlu2 %957, %v1102_v9  }
  0x49   : > { %383 = vperm.xlu1 %956, %v1086_v4   ;;  %391 = vperm.xlu0 %958, %v1099_v8  }
  0x50   : > { %399 = vperm.xlu2 %957, %v237_v12  }
  0x51   : > { %395 = vperm.xlu1 %956, %v236_v7   ;;  %403 = vperm.xlu0 %958, %v1110_v11  }
  0x58   : > { %411 = vperm.xlu2 %957, %v240_v15  }
  0x59   : > { %407 = vperm.xlu1 %956, %v1107_v10   ;;  %415 = vperm.xlu0 %958, %v241_v14  }
  0x60   : > { %960 = vset.pattern.permute.xlu2 %v1023_v18 }
  0x61   : > { %959 = vset.pattern.permute.xlu1 %v1023_v18  ;;  %961 = vset.pattern.permute.xlu0 %v1023_v18 }
  0x62   : > { %496 = vperm.xlu2 %960, %v237_v12   ;;  %492 = vperm.xlu1 %959, %v236_v7  }
  0x63   : > { %508 = vperm.xlu0 %961, %v240_v15  }
  0x69   : > { %v272_v19 = vpop.permute.xlu2 %271 }
  0x6a   : > { %962 = vset.pattern.permute.xlu2 %v1024_v20  ;;  %512 = vperm.xlu1 %959, %v241_v14   ;;  %v334_v40 = vmul.f32 %v1167_v30, %v272_v19 }
  0x6b   : > { %500 = vperm.xlu0 %961, %v1110_v11   ;;  %589 = vperm.xlu2 %962, %v236_v7  }
  0x6c   : > { %v350_v44 = vadd.f32 %v1178_v32, %v334_v40 }
  0x71   : > { %v1143_v21 = vpop.permute.xlu2 %276 }
  0x72   : > { %963 = vset.pattern.permute.xlu1 %v1024_v20 }
  0x73   : > { %484 = vperm.xlu0 %961, %v1102_v9   ;;  %605 = vperm.xlu2 %962, %v240_v15  }
  0x74   : > { %593 = vperm.xlu1 %963, %v237_v12  }
  0x79   : > { %v1147_v22 = vpop.permute.xlu2 %291 }
  0x7b   : > { %976 = vset.pattern.permute.xlu0 %v1024_v20  ;;  %965 = vset.pattern.permute.xlu2 %v1023_v18 }
  0x7c   : > { %964 = vset.pattern.permute.xlu1 %v1023_v18  ;;  %609 = vperm.xlu0 %976, %v241_v14  }
  0x7d   : > { %464 = vperm.xlu2 %965, %v1092_v6   ;;  %460 = vperm.xlu1 %964, %v1080_v3  }
  0x81   : > { %v1154_v23 = vpop.permute.xlu2 %306  ;;  %v262_v24 = vpop.permute.xlu1 %261 }
  0x82   : > { %v252_v25 = vpop.permute.xlu0 %251  ;;  %v332_v62 = vmul.f32 %v1167_v30, %v262_v24 }
  0x83   : > { %v330_v54 = vmul.f32 %v1167_v30, %v252_v25 }
  0x84   : > { %557 = vperm.xlu0 %976, %v1080_v3  }
  0x85   : > { %480 = vperm.xlu2 %965, %v1086_v4   ;;  %476 = vperm.xlu1 %964, %v1074_v1   ;;  %v346_v55 = vadd.f32 %v1178_v32, %v330_v54  ;;  %v1302_v54 = vperm.slane %v1162_v26, 2 }
  0x89   : > { %v1164_v27 = vpop.permute.xlu2 %321  ;;  %v267_v28 = vpop.permute.xlu1 %266 }
  0x8a   : > { %v257_v29 = vpop.permute.xlu0 %256  ;;  %v333_v63 = vmul.f32 %v1167_v30, %v267_v28  ;;  %v913_v28 = vld [vmem:[%s1417_s3 + $0x20] sm:$0xff] }
  0x8b   : > { %v331_v31 = vmul.f32 %v1167_v30, %v257_v29 }
  0x8c   : > { %577 = vperm.xlu0 %976, %v1086_v4   ;;  %v348_v4 = vadd.f32 %v1178_v32, %v332_v62 }
  0x8d   : > { %967 = vset.pattern.permute.xlu2 %v1024_v20  ;;  %966 = vset.pattern.permute.xlu1 %v1024_v20  ;;  %v347_v33 = vadd.f32 %v1178_v32, %v331_v31 }
  0x8e   : > { %573 = vperm.xlu2 %967, %v1074_v1   ;;  %561 = vperm.xlu1 %966, %v1092_v6   ;;  %v349_v6 = vadd.f32 %v1178_v32, %v333_v63  ;;  %v1311_v63 = vperm.slane %v1162_v26, 3 }
  0x91   : > { %v287_v34 = vpop.permute.xlu1 %286 }
  0x92   : > { %v368_v36 = vpop.permute.xlu2 %367  ;;  %v282_v37 = vpop.permute.xlu0 %281  ;;  %v337_v14 = vmul.f32 %v1167_v30, %v287_v34  ;;  %v912_v34 = vld [vmem:[%s1417_s3 + $0x18] sm:$0xff] }
  0x93   : > { %v428_v38 = vmul.f32 %v1182_v35, %v368_v36  ;;  %v336_v46 = vmul.f32 %v1167_v30, %v282_v37 }
  0x94   : > { %601 = vperm.xlu0 %976, %v1107_v10   ;;  %v353_v19 = vadd.f32 %v1178_v32, %v337_v14 }
  0x95   : > { %v1186_v39 = vadd.f32 %v428_v38, %v347_v33  ;;  %v352_v48 = vadd.f32 %v1178_v32, %v336_v46 }
  0x96   : > { %969 = vset.pattern.permute.xlu2 %v1022_v17  ;;  %968 = vset.pattern.permute.xlu1 %v1022_v17  ;;  %v914_v17 = vld [vmem:[%s1417_s3 + $0x28] sm:$0xff] }
  0x97   : > { %423 = vperm.xlu2 %969, %v1122_v16   ;;  %419 = vperm.xlu1 %968, %v1116_v13  }
  0x99   : > { %v1193_v41 = vpop.permute.xlu1 %301 }
  0x9a   : > { %v380_v42 = vpop.permute.xlu2 %379  ;;  %v1195_v43 = vpop.permute.xlu0 %296  ;;  %v340_v29 = vmul.f32 %v1167_v30, %v1193_v41 }
  0x9b   : > { %v431_v45 = vmul.f32 %v1182_v35, %v380_v42 }
  0x9c   : > { %585 = vperm.xlu0 %976, %v1099_v8   ;;  %v356_v36 = vadd.f32 %v1178_v32, %v340_v29 }
  0x9d   : > { %v1201_v47 = vadd.f32 %v431_v45, %v350_v44 }
  0x9f   : > { %971 = vset.pattern.permute.xlu2 %v1023_v18  ;;  %970 = vset.pattern.permute.xlu1 %v1023_v18 }
  0xa0   : > { %516 = vperm.xlu2 %971, %v1116_v13   ;;  %504 = vperm.xlu1 %970, %v1107_v10  }
  0xa1   : > { %v1208_v49 = vpop.permute.xlu1 %316 }
  0xa2   : > { %v388_v50 = vpop.permute.xlu2 %387  ;;  %v1210_v51 = vpop.permute.xlu0 %311 }
  0xa3   : > { %v433_v52 = vmul.f32 %v1182_v35, %v388_v50 }
  0xa5   : > { %v1213_v53 = vadd.f32 %v433_v52, %v352_v48  ;;  %v338_v52 = vmul.f32 %v1167_v30, %v1147_v22  ;;  %v342_v22 = vmul.f32 %v1167_v30, %v1210_v51 }
  0xa7   : > { %v354_v62 = vadd.f32 %v1178_v32, %v338_v52  ;;  %v358_v26 = vadd.f32 %v1178_v32, %v342_v22 }
  0xa8   : > { %972 = vset.pattern.permute.xlu2 %v1024_v20  ;;  %520 = vperm.xlu1 %970, %v1122_v16  }
  0xa9   : > { %597 = vperm.xlu2 %972, %v1110_v11  }
  0xaa   : > { %v1220_v56 = vpop.permute.xlu2 %399  ;;  %v1222_v57 = vpop.permute.xlu0 %326 }
  0xab   : > { %v364_v58 = vpop.permute.xlu1 %363 }
  0xac   : > { %v427_v59 = vmul.f32 %v1182_v35, %v364_v58 }
  0xae   : > { %v1225_v60 = vadd.f32 %v427_v59, %v346_v55  ;;  %v339_v59 = vmul.f32 %v1167_v30, %v1195_v43 }
  0xb0   : > { %973 = vset.pattern.permute.xlu1 %v1024_v20 }
  0xb1   : > { %617 = vperm.xlu2 %972, %v1122_v16   ;;  %613 = vperm.xlu1 %973, %v1116_v13   ;;  %v915_v13 = vld [vmem:[%s1417_s3 + $0x30] sm:$0xff] }
  0xb2   : > { %v1235_v0 = vpop.permute.xlu2 %411  ;;  %921 = vmatpush.bf16.msra.mxu2 %v915_v13  ;;  %922 = vmatpush.bf16.msra.mxu3 %v915_v13 }
  0xb3   : > { %v376_v1 = vpop.permute.xlu1 %375  ;;  %v372_v3 = vpop.permute.xlu0 %371  ;;  %920 = vmatpush.bf16.msra.mxu1 %v915_v13  ;;  %746 = vmatpush.bf16.msra.mxu0 %v915_v13  ;;  %v439_v14 = vmul.f32 %v1182_v35, %v1235_v0 }
  0xb4   : > { %v430_v7 = vmul.f32 %v1182_v35, %v376_v1  ;;  %v429_v10 = vmul.f32 %v1182_v35, %v372_v3 }
  0xb6   : > { %v1241_v11 = vadd.f32 %v430_v7, %v349_v6  ;;  %v1243_v12 = vadd.f32 %v429_v10, %v348_v4  ;;  %924 = vmatpush.bf16.msra.mxu2 %v914_v17  ;;  %925 = vmatpush.bf16.msra.mxu3 %v914_v17  ;;  %v355_v4 = vadd.f32 %v1178_v32, %v339_v59 }
  0xb7   : > { %923 = vmatpush.bf16.msra.mxu1 %v914_v17  ;;  %747 = vmatpush.bf16.msra.mxu0 %v914_v17  ;;  %v436_v6 = vmul.f32 %v1182_v35, %v1220_v56 }
  0xb9   : > { %975 = vset.pattern.permute.xlu2 %v1023_v18  ;;  %974 = vset.pattern.permute.xlu1 %v1023_v18 }
  0xba   : > { %472 = vperm.xlu2 %975, %v1089_v5   ;;  %468 = vperm.xlu1 %974, %v1077_v2  }
  0xbb   : > { %v1253_v15 = vpop.permute.xlu1 %383  ;;  %v392_v16 = vpop.permute.xlu0 %391  ;;  %927 = vmatpush.bf16.msra.mxu2 %v913_v28  ;;  %928 = vmatpush.bf16.msra.mxu3 %v913_v28 }
  0xbc   : > { %v434_v24 = vmul.f32 %v1182_v35, %v392_v16  ;;  %v1260_v18 = vpop.permute.xlu2 %496  ;;  %926 = vmatpush.bf16.msra.mxu1 %v913_v28  ;;  %748 = vmatpush.bf16.msra.mxu0 %v913_v28  ;;  %v452_v16 = vadd.f32 %v436_v6, %v355_v4  ;;  %v343_v28 = vmul.f32 %v1167_v30, %v1208_v49 }
  0xbd   : > { %v533_v10 = vmul.f32 %v1302_v54, %v1260_v18  ;;  %v432_v22 = vmul.f32 %v1182_v35, %v1253_v15 }
  0xbe   : > { %v1262_v25 = vadd.f32 %v434_v24, %v353_v19 }
  0xbf   : > { %930 = vmatpush.bf16.msra.mxu2 %v912_v34  ;;  %931 = vmatpush.bf16.msra.mxu3 %v912_v34  ;;  %v549_v29 = vadd.f32 %v533_v10, %v452_v16 }
  0xc0   : > { %929 = vmatpush.bf16.msra.mxu1 %v912_v34  ;;  %749 = vmatpush.bf16.msra.mxu0 %v912_v34 }
  0xc2   : > { %977 = vset.pattern.permute.xlu2 %v1024_v20  ;;  %488 = vperm.xlu1 %974, %v1099_v8   ;;  %v911_v8 = vld [vmem:[%s1417_s3 + $0x10] sm:$0xff] }
  0xc3   : > { %565 = vperm.xlu2 %977, %v1077_v2   ;;  %v396_v31 = vpop.permute.xlu1 %395  ;;  %v404_v33 = vpop.permute.xlu0 %403  ;;  %v341_v2 = vmul.f32 %v1167_v30, %v1154_v23  ;;  %933 = vmatpush.bf16.msra.mxu2 %v911_v8  ;;  %v910_v23 = vld [vmem:[%s1417_s3 + $0x8] sm:$0xff] }
  0xc4   : > { %v437_v37 = vmul.f32 %v1182_v35, %v404_v33  ;;  %934 = vmatpush.bf16.msra.mxu3 %v911_v8  ;;  %932 = vmatpush.bf16.msra.mxu1 %v911_v8  ;;  %v435_v55 = vmul.f32 %v1182_v35, %v396_v31  ;;  %v455_v31 = vadd.f32 %v439_v14, %v358_v26 }
  0xc5   : > { %v590_v38 = vpop.permute.xlu2 %589  ;;  %v357_v44 = vadd.f32 %v1178_v32, %v341_v2  ;;  %750 = vmatpush.bf16.msra.mxu0 %v911_v8 }
  0xc6   : > { %v1277_v40 = vadd.f32 %v437_v37, %v356_v36  ;;  %v451_v3 = vadd.f32 %v435_v55, %v354_v62  ;;  %v629_v43 = vmul.f32 %v1311_v63, %v590_v38  ;;  %v359_v38 = vadd.f32 %v1178_v32, %v343_v28 }
  0xc7   : > { %936 = vmatpush.bf16.msra.mxu2 %v910_v23  ;;  %v335_v55 = vmul.f32 %v1167_v30, %v1143_v21 }
  0xc8   : > { %937 = vmatpush.bf16.msra.mxu3 %v910_v23  ;;  %935 = vmatpush.bf16.msra.mxu1 %v910_v23 }
  0xc9   : > { %751 = vmatpush.bf16.msra.mxu0 %v910_v23 }
  0xca   : > { %978 = vset.pattern.permute.xlu1 %v1024_v20 }
  0xcb   : > { %581 = vperm.xlu2 %977, %v1102_v9   ;;  %569 = vperm.xlu1 %978, %v1089_v5   ;;  %v408_v41 = vpop.permute.xlu1 %407  ;;  %v416_v42 = vpop.permute.xlu0 %415  ;;  %v909_v5 = vld [vmem:[%s1417_s3] sm:$0xff] }
  0xcc   : > { %v438_v45 = vmul.f32 %v1182_v35, %v408_v41  ;;  %939 = vmatpush.bf16.msra.mxu2 %v909_v5  ;;  %940 = vmatpush.bf16.msra.mxu3 %v909_v5  ;;  %v440_v0 = vmul.f32 %v1182_v35, %v416_v42 }
  0xcd   : > { %v606_v20 = vpop.permute.xlu2 %605  ;;  %938 = vmatpush.bf16.msra.mxu1 %v909_v5  ;;  %752 = vmatpush.bf16.msra.mxu0 %v909_v5 }
  0xce   : > { %v1292_v46 = vadd.f32 %v438_v45, %v357_v44  ;;  %v633_v36 = vmul.f32 %v1311_v63, %v606_v20  ;;  %v456_v8 = vadd.f32 %v440_v0, %v359_v38 }
  0xd4   : > { %v493_v9 = vpop.permute.xlu1 %492 }
  0xd5   : > { %v509_v48 = vpop.permute.xlu0 %508  ;;  %v532_v1 = vmul.f32 %v1302_v54, %v493_v9 }
  0xd6   : > { %v536_v19 = vmul.f32 %v1302_v54, %v509_v48 }
  0xd7   : > { %v1297_v50 = vpop.permute.xlu2 %464  ;;  %v548_v7 = vadd.f32 %v532_v1, %v451_v3 }
  0xd8   : > { %v552_v37 = vadd.f32 %v536_v19, %v455_v31  ;;  %v525_v14 = vmul.f32 %v1302_v54, %v1297_v50 }
  0xd9   : > { %v645_v17 = vadd.f32 %v629_v43, %v548_v7  ;;  %v351_v7 = vadd.f32 %v1178_v32, %v335_v55 }
  0xda   : > { %v649_v41 = vadd.f32 %v633_v36, %v552_v37  ;;  %v541_v28 = vadd.f32 %v525_v14, %v1186_v39 }
  0xdb   : > { %981 = vtanh.f32 %v645_v17  ;;  %v448_v26 = vadd.f32 %v432_v22, %v351_v7 }
  0xdc   : > { %v513_v58 = vpop.permute.xlu1 %512 }
  0xdd   : > { %v1307_v61 = vpop.permute.xlu0 %500  ;;  %v537_v2 = vmul.f32 %v1302_v54, %v513_v58 }
  0xde   : > { %v534_v39 = vmul.f32 %v1302_v54, %v1307_v61 }
  0xdf   : > { %v481_v13 = vpop.permute.xlu2 %480  ;;  %v553_v45 = vadd.f32 %v537_v2, %v456_v8 }
  0xe0   : > { %v529_v10 = vmul.f32 %v1302_v54, %v481_v13 }
  0xe1   : > { %v982_v5 = vpop.eup %981 }
  0xe2   : > { %v545_v19 = vadd.f32 %v529_v10, %v448_v26 }
  0xe5   : > { %v485_v51 = vpop.permute.xlu0 %484 }
  0xe6   : > { %v530_v24 = vmul.f32 %v1302_v54, %v485_v51  ;;  %v594_v56 = vpop.permute.xlu1 %593 }
  0xe7   : > { %v630_v18 = vmul.f32 %v1311_v63, %v594_v56 }
  0xe8   : > { %v1331_v33 = vadd.f32 %v530_v24, %v1213_v53  ;;  %v574_v49 = vpop.permute.xlu2 %573 }
  0xe9   : > { %v646_v34 = vadd.f32 %v630_v18, %v549_v29  ;;  %v625_v3 = vmul.f32 %v1311_v63, %v574_v49 }
  0xeb   : > { %983 = vtanh.f32 %v646_v34 }
  0xec   : > { %985 = vtanh.f32 %v649_v41  ;;  %v550_v41 = vadd.f32 %v534_v39, %v1277_v40 }
  0xee   : > { %v610_v44 = vpop.permute.xlu0 %609 }
  0xef   : > { %v634_v53 = vmul.f32 %v1311_v63, %v610_v44  ;;  %v461_v23 = vpop.permute.xlu1 %460 }
  0xf0   : > { %v524_v4 = vmul.f32 %v1302_v54, %v461_v23 }
  0xf1   : > { %v984_v42 = vpop.eup %983  ;;  %v650_v9 = vadd.f32 %v634_v53, %v553_v45  ;;  %v424_v48 = vpop.permute.xlu2 %423 }
  0xf2   : > { %v673_v20 = vpack.c.bf16 %v984_v42, %v982_v5  ;;  %v986_v59 = vpop.eup %985  ;;  %v540_v15 = vadd.f32 %v524_v4, %v1225_v60  ;;  %v345_v42 = vmul.f32 %v1167_v30, %v1222_v57  ;;  %v442_v61 = vmul.f32 %v1182_v35, %v424_v48 }
  0xf3   : > { %987 = vtanh.f32 %v650_v9 }
  0xf4   : > { %773 = vmatmul.bf16.vlgmr.msra.gmra.mxu2 %v673_v20  ;;  %v344_v20 = vmul.f32 %v1167_v30, %v1164_v27 }
  0xf6   : > { %v558_v52 = vpop.permute.xlu0 %557  ;;  %v360_v57 = vadd.f32 %v1178_v32, %v344_v20 }
  0xf7   : > { %v477_v58 = vpop.permute.xlu1 %476  ;;  %v621_v21 = vmul.f32 %v1311_v63, %v558_v52  ;;  %v361_v52 = vadd.f32 %v1178_v32, %v345_v42 }
  0xf8   : > { %v528_v62 = vmul.f32 %v1302_v54, %v477_v58 }
  0xf9   : > { %v988_v1 = vpop.eup %987  ;;  %v637_v24 = vadd.f32 %v621_v21, %v540_v15 }
  0xfa   : > { %v544_v6 = vadd.f32 %v528_v62, %v1201_v47  ;;  %v675_v43 = vpack.c.bf16 %v988_v1, %v986_v59  ;;  %v517_v16 = vpop.permute.xlu2 %516 }
  0xfc   : > { %783 = vmatmul.bf16.vlgmr.msra.gmra.mxu3 %v675_v43  ;;  %v641_v51 = vadd.f32 %v625_v3, %v544_v6  ;;  %v538_v3 = vmul.f32 %v1302_v54, %v517_v16 }
  0xfe   : > { %v578_v17 = vpop.permute.xlu0 %577  ;;  %989 = vtanh.f32 %v641_v51 }
  0xff   : > { %v626_v47 = vmul.f32 %v1311_v63, %v578_v17 }
 0x100   : > { %v562_v56 = vpop.permute.xlu1 %561 }
 0x101   : > { %v642_v13 = vadd.f32 %v626_v47, %v545_v19  ;;  %v622_v29 = vmul.f32 %v1311_v63, %v562_v56 }
 0x103   : > { %991 = vtanh.f32 %v642_v13  ;;  %v638_v18 = vadd.f32 %v622_v29, %v541_v28  ;;  %v598_v50 = vpop.permute.xlu2 %597 }
 0x104   : > { %993 = vtanh.f32 %v637_v24  ;;  %v990_v31 = vpop.eup %989  ;;  %v631_v2 = vmul.f32 %v1311_v63, %v598_v50 }
 0x105   : > { %995 = vtanh.f32 %v638_v18 }
 0x106   : > { %v602_v49 = vpop.permute.xlu0 %601  ;;  %v647_v23 = vadd.f32 %v631_v2, %v550_v41 }
 0x107   : > { %v632_v53 = vmul.f32 %v1311_v63, %v602_v49 }
 0x108   : > { %997 = vtanh.f32 %v647_v23 }
 0x109   : > { %v992_v60 = vpop.eup %991  ;;  %v420_v0 = vpop.permute.xlu1 %419 }
 0x10a   : > { %v994_v34 = vpop.eup %993  ;;  %v671_v36 = vpack.c.bf16 %v992_v60, %v990_v31  ;;  %v441_v59 = vmul.f32 %v1182_v35, %v420_v0 }
 0x10b   : > { %v996_v37 = vpop.eup %995  ;;  %v618_v8 = vpop.permute.xlu2 %617 }
 0x10c   : > { %763 = vmatmul.bf16.vlgmr.msra.gmra.mxu1 %v671_v36  ;;  %v669_v38 = vpack.c.bf16 %v996_v37, %v994_v34  ;;  %v636_v22 = vmul.f32 %v1311_v63, %v618_v8  ;;  %v457_v4 = vadd.f32 %v441_v59, %v360_v57 }
 0x10e   : > { %753 = vmatmul.bf16.vlgmr.msra.gmra.mxu0 %v669_v38  ;;  %v998_v62 = vpop.eup %997  ;;  %v554_v43 = vadd.f32 %v538_v3, %v457_v4  ;;  %v586_v51 = vpop.permute.xlu0 %585 }
 0x10f   : > { %v628_v56 = vmul.f32 %v1311_v63, %v586_v51 }
 0x112   : > { %v505_v44 = vpop.permute.xlu1 %504 }
 0x113   : > { %v535_v45 = vmul.f32 %v1302_v54, %v505_v44 }
 0x114   : > { %v473_v55 = vpop.permute.xlu2 %472 }
 0x115   : > { %v551_v5 = vadd.f32 %v535_v45, %v1292_v46  ;;  %v458_v46 = vadd.f32 %v442_v61, %v361_v52  ;;  %v527_v50 = vmul.f32 %v1302_v54, %v473_v55 }
 0x117   : > { %v648_v9 = vadd.f32 %v632_v53, %v551_v5  ;;  %v543_v0 = vadd.f32 %v527_v50, %v1241_v11 }
 0x119   : > { %999 = vtanh.f32 %v648_v9 }
 0x11a   : > { %v521_v40 = vpop.permute.xlu1 %520 }
 0x11b   : > { %v539_v58 = vmul.f32 %v1302_v54, %v521_v40 }
 0x11d   : > { %v555_v48 = vadd.f32 %v539_v58, %v458_v46  ;;  %v566_v10 = vpop.permute.xlu2 %565 }
 0x11e   : > { %v623_v13 = vmul.f32 %v1311_v63, %v566_v10 }
 0x11f   : > { %v1000_v1 = vpop.eup %999  ;;  %v652_v30 = vadd.f32 %v636_v22, %v555_v48 }
 0x120   : > { %v674_v27 = vpack.c.bf16 %v1000_v1, %v998_v62 }
 0x121   : > { %1001 = vtanh.f32 %v652_v30 }
 0x122   : > { %778 = vmatmul.bf16.gmra.mxu2 %v674_v27 }
 0x123   : > { %v614_v6 = vpop.permute.xlu1 %613 }
 0x124   : > { %v635_v7 = vmul.f32 %v1311_v63, %v614_v6 }
 0x125   : > { %v582_v14 = vpop.permute.xlu2 %581 }
 0x126   : > { %v651_v35 = vadd.f32 %v635_v7, %v554_v43  ;;  %v627_v16 = vmul.f32 %v1311_v63, %v582_v14 }
 0x127   : > { %v1002_v32 = vpop.eup %1001 }
 0x128   : > { %1003 = vtanh.f32 %v651_v35  ;;  %v643_v24 = vadd.f32 %v627_v16, %v1331_v33 }
 0x12a   : > { %1005 = vtanh.f32 %v643_v24 }
 0x12c   : > { %v469_v21 = vpop.permute.xlu1 %468 }
 0x12d   : > { %v526_v19 = vmul.f32 %v1302_v54, %v469_v21 }
 0x12e   : > { %v1004_v26 = vpop.eup %1003 }
 0x12f   : > { %v676_v15 = vpack.c.bf16 %v1002_v32, %v1004_v26  ;;  %v542_v29 = vadd.f32 %v526_v19, %v1243_v12 }
 0x130   : > { %v1006_v34 = vpop.eup %1005 }
 0x131   : > { %788 = vmatmul.bf16.gmra.mxu3 %v676_v15  ;;  %v639_v31 = vadd.f32 %v623_v13, %v542_v29 }
 0x134   : > { %v489_v17 = vpop.permute.xlu1 %488 }
 0x135   : > { %v531_v47 = vmul.f32 %v1302_v54, %v489_v17  ;;  %v980_v54 = vld [vmem:[%s1418_s4] ss:$0 sm:$0xff] }
 0x137   : > { %v547_v28 = vadd.f32 %v531_v47, %v1262_v25 }
 0x139   : > { %v644_v18 = vadd.f32 %v628_v56, %v547_v28 }
 0x13b   : > { %1007 = vtanh.f32 %v644_v18 }
 0x13c   : > { %1009 = vtanh.f32 %v639_v31 }
 0x13d   : > { %v570_v60 = vpop.permute.xlu1 %569 }
 0x13e   : > { %v624_v33 = vmul.f32 %v1311_v63, %v570_v60 }
 0x140   : > { %v640_v36 = vadd.f32 %v624_v33, %v543_v0 }
 0x141   : > { %v1008_v37 = vpop.eup %1007 }
 0x142   : > { %1011 = vtanh.f32 %v640_v36  ;;  %v672_v25 = vpack.c.bf16 %v1008_v37, %v1006_v34  ;;  %v1010_v12 = vpop.eup %1009 }
 0x144   : > { %768 = vmatmul.bf16.gmra.mxu1 %v672_v25 }
 0x148   : > { %v1012_v38 = vpop.eup %1011 }
 0x149   : > { %v670_v39 = vpack.c.bf16 %v1012_v38, %v1010_v12 }
 0x14b   : > { %758 = vmatmul.bf16.gmra.mxu0 %v670_v39 }
 0x177   : > { %v774_v11 = vpop.f32.mrf.mxu2 }
 0x178   : > { %v775_v63 = vadd.f32 %v980_v54, %v774_v11 }
 0x17a   : > { %802 = vst [vmem:[%s1393_s27 + $0x40] sm:$0xff] %v775_v63 }
 0x17f   : > { %v776_v2 = vpop.f32.mrf.mxu2  ;;  %v784_v49 = vpop.f32.mrf.mxu3 }
 0x180   : > { %v777_v8 = vadd.f32 %v980_v54, %v776_v2  ;;  %v785_v41 = vadd.f32 %v980_v54, %v784_v49 }
 0x182   : > { %803 = vst [vmem:[%s1393_s27 + $0x48] sm:$0xff] %v777_v8 }
 0x183   : > { %806 = vst [vmem:[%s1393_s27 + $0x60] sm:$0xff] %v785_v41 }
 0x187   : > { %v786_v44 = vpop.f32.mrf.mxu3 }
 0x188   : > { %v787_v45 = vadd.f32 %v980_v54, %v786_v44 }
 0x189   : > { %v764_v53 = vpop.f32.mrf.mxu1 }
 0x18a   : > { %807 = vst [vmem:[%s1393_s27 + $0x68] sm:$0xff] %v787_v45  ;;  %v765_v23 = vadd.f32 %v980_v54, %v764_v53 }
 0x18b   : > { %v754_v5 = vpop.f32.mrf.mxu0 }
 0x18c   : > { %798 = vst [vmem:[%s1393_s27 + $0x20] sm:$0xff] %v765_v23  ;;  %v755_v42 = vadd.f32 %v980_v54, %v754_v5 }
 0x18e   : > { %794 = vst [vmem:[%s1393_s27] sm:$0xff] %v755_v42 }
 0x191   : > { %v766_v9 = vpop.f32.mrf.mxu1 }
 0x192   : > { %v767_v61 = vadd.f32 %v980_v54, %v766_v9 }
 0x193   : > { %v756_v20 = vpop.f32.mrf.mxu0 }
 0x194   : > { %799 = vst [vmem:[%s1393_s27 + $0x28] sm:$0xff] %v767_v61  ;;  %v757_v40 = vadd.f32 %v980_v54, %v756_v20 }
 0x196   : > { %795 = vst [vmem:[%s1393_s27 + $0x8] sm:$0xff] %v757_v40 }
 0x1a5   : > { %v779_v52 = vpop.f32.mrf.mxu2 }
 0x1a6   : > { %v780_v55 = vadd.f32 %v980_v54, %v779_v52 }
 0x1a8   : > { %804 = vst [vmem:[%s1393_s27 + $0x50] sm:$0xff] %v780_v55 }
 0x1ad   : > { %v781_v58 = vpop.f32.mrf.mxu2 }
 0x1ae   : > { %v782_v59 = vadd.f32 %v980_v54, %v781_v58 }
 0x1b0   : > { %805 = vst [vmem:[%s1393_s27 + $0x58] sm:$0xff] %v782_v59 }
 0x1b4   : > { %v789_v46 = vpop.f32.mrf.mxu3 }
 0x1b5   : > { %v790_v62 = vadd.f32 %v980_v54, %v789_v46 }
 0x1b7   : > { %808 = vst [vmem:[%s1393_s27 + $0x70] sm:$0xff] %v790_v62 }
 0x1bc   : > { %v791_v57 = vpop.f32.mrf.mxu3 }
 0x1bd   : > { %v792_v1 = vadd.f32 %v980_v54, %v791_v57 }
 0x1bf   : > { %809 = vst [vmem:[%s1393_s27 + $0x78] sm:$0xff] %v792_v1 }
 0x1c1   : > { %v769_v22 = vpop.f32.mrf.mxu1 }
 0x1c2   : > { %v770_v48 = vadd.f32 %v980_v54, %v769_v22 }
 0x1c4   : > { %800 = vst [vmem:[%s1393_s27 + $0x30] sm:$0xff] %v770_v48 }
 0x1c8   : > { %v759_v3 = vpop.f32.mrf.mxu0 }
 0x1c9   : > { %v760_v4 = vadd.f32 %v980_v54, %v759_v3  ;;  %v771_v27 = vpop.f32.mrf.mxu1 }
 0x1ca   : > { %v772_v30 = vadd.f32 %v980_v54, %v771_v27 }
 0x1cb   : > { %796 = vst [vmem:[%s1393_s27 + $0x10] sm:$0xff] %v760_v4 }
 0x1cc   : > { %801 = vst [vmem:[%s1393_s27 + $0x38] sm:$0xff] %v772_v30 }
 0x1d0   : > { %v761_v6 = vpop.f32.mrf.mxu0 }
 0x1d1   : > { %v762_v43 = vadd.f32 %v980_v54, %v761_v6 }
 0x1d3   : > { %797 = vst [vmem:[%s1393_s27 + $0x18] sm:$0xff] %v762_v43 }
 0x1d4 PF: > { %s15_s18 = sadd.s32 1, %s1019_s18  }
 0x1d5   : > { %p12_p4 = scmp.ge.s32.totalorder %s15_s18, 4  }
 0x1d7   :  { %14 = sbr.rel (!%p12_p4) target bundleno = 1 (0x1), region = 70 }

</bundles_post_ra>
